<compile_context>
chip_gen: v7x
topology: tpu7x:2x2x1
jax: 0.10.0
libtpu: 0.0.40
codegen_flags: <defaults>
</compile_context>

<pallas_src>
import functools

import jax
import jax.numpy as jnp
from jax import lax
from jax.experimental import pallas as pl
from jax.experimental.pallas import tpu as pltpu


_SUB_LANES = 512  # lane width of the in-kernel f32 reduction sub-chunks


def _round_up(x, m):
    return -(-x // m) * m


def _router_kernel(patch_ref, keys_ref, w_ref, emb_ref, acc_ref, *,
                   threshold, sub_hw):
    # patch_ref: (tn, C, thw) native dtype   keys_ref: (E, C) f32
    # acc_ref:   (tn, C) f32 scratch, persistent across the HW-chunk axis.
    j = pl.program_id(1)

    @pl.when(j == 0)
    def _():
        acc_ref[...] = jnp.zeros_like(acc_ref)

    tn, c, thw = patch_ref.shape
    n_full = thw // sub_hw
    rem = thw - n_full * sub_hw

    # --- SSP partial sum over this HW chunk (f32 accumulation, no full-tile
    #     f32 temporary: each sub-chunk cast is at most (tn, C, sub_hw)) ---
    if n_full == 1 and rem == 0:
        partial = jnp.sum(patch_ref[...].astype(jnp.float32), axis=-1)
    else:
        def body(s, a):
            off = pl.multiple_of(s * sub_hw, sub_hw)
            x = patch_ref[:, :, pl.ds(off, sub_hw)]
            return a + jnp.sum(x.astype(jnp.float32), axis=-1)

        partial = lax.fori_loop(0, n_full, body,
                                jnp.zeros((tn, c), jnp.float32),
                                unroll=(n_full <= 8))
        if rem > 0:
            x = patch_ref[:, :, pl.ds(n_full * sub_hw, rem)]
            partial = partial + jnp.sum(x.astype(jnp.float32), axis=-1)

    acc_ref[...] += partial

    # --- finalize on the last HW chunk ---
    @pl.when(j == pl.num_programs(1) - 1)
    def _():
        emb = acc_ref[...]                                        # (tn, C) f32
        # F.normalize(dim=-1), eps=1e-12  ==  emb * rsqrt(max(sumsq, 1e-24))
        sumsq = jnp.sum(emb * emb, axis=-1, keepdims=True)
        emb = emb * lax.rsqrt(jnp.maximum(sumsq, 1e-24))
        emb_ref[...] = emb

        # logits = patch_emb @ keys.T  (contract last dims: no XLU transpose)
        logits = lax.dot_general(
            emb, keys_ref[...],
            dimension_numbers=(((1,), (1,)), ((), ())),
            preferred_element_type=jnp.float32)                   # (tn, E)

        # softmax over experts (exact reciprocal; hidden under the input DMA)
        m = jnp.max(logits, axis=-1, keepdims=True)
        e = jnp.exp(logits - m)
        w = e * pl.reciprocal(jnp.sum(e, axis=-1, keepdims=True), approx=False)

        # threshold mask + renormalize
        w = jnp.where(w > threshold, w, jnp.zeros_like(w))
        w = w * pl.reciprocal(jnp.sum(w, axis=-1, keepdims=True) + 1e-8,
                              approx=False)
        w_ref[...] = w


def _vmem_limit_bytes():
    """Generation-aware scoped-VMEM limit (headroom below physical capacity)."""
    cap = 128 * 1024 * 1024
    try:
        info = pltpu.get_tpu_info()
        cap = int(getattr(info, "vmem_capacity_bytes", cap))
    except Exception:  # pragma: no cover - conservative fallback off-TPU
        pass
    if cap <= 64 * 1024 * 1024:          # v7x: 64 MiB per TensorCore
        return 48 * 1024 * 1024
    return 64 * 1024 * 1024              # v5e / v6e: 128 MiB physical


def _choose_tiles(n, c, hw, e, dtype, vmem_limit):
    """Pick (tn, thw) so the *padded* VMEM footprint fits under vmem_limit.

    Footprint counted: 2x input tile (double-buffered), f32 reduce sub-chunk
    temp, 2x each (small) output buffer, the (tn, C) accumulator, keys, slack.
    """
    itemsize = jnp.dtype(dtype).itemsize
    pack = 8 * max(1, 4 // itemsize)          # sublane packing: 8 f32 / 16 bf16 / 32 i8
    c_pad = _round_up(c, pack)
    hw_pad = _round_up(hw, 128)
    lane_c = _round_up(c, 128)
    lane_e = _round_up(e, 128)

    slack = 2 * 1024 * 1024
    keys_bytes = _round_up(e, 8) * lane_c * 4

    in_row = c_pad * hw_pad * itemsize                      # one input buffer, per N-row
    tmp_row = c_pad * min(hw_pad, _SUB_LANES) * 4           # f32 reduce temp, per N-row
    out_row = 2 * (lane_e + lane_c) * 4                     # both outputs, double-buffered
    acc_row = lane_c * 4
    row_total = 2 * in_row + tmp_row + out_row + acc_row

    budget = max(1 << 20, vmem_limit - keys_bytes - slack)
    tn_max = budget // row_total

    if tn_max >= 8:
        tn = min(n, max(8, (tn_max // 8) * 8))
        return tn, hw

    # Rows too large: keep tn = 8 and chunk HW along a reduction grid axis.
    tn = min(n, 8)
    fixed = tn * (tmp_row + out_row + acc_row)
    avail = max(0, budget - fixed)
    max_thw = max(128, avail // (2 * tn * c_pad * itemsize))
    best = 0
    d = 128
    while d < hw:
        if hw % d == 0 and d <= max_thw:
            best = d
        d += 128
    if best == 0:
        # TODO(synk): no 128-aligned divisor of HW fits the VMEM budget; fall
        # back to the full spatial extent (may exceed vmem_limit for extreme
        # C*H*W shapes — raise the limit or pre-pool outside the kernel).
        best = hw
    return tn, best


def router_weights(patch_nchw, keys, threshold):
    """patch_nchw: (N, C, H, W) any float dtype; keys: (E, C); threshold: python float.

    Returns (weights (N, E) f32, patch_emb (N, C) f32)."""
    N, C, H, W = patch_nchw.shape
    E = keys.shape[0]
    HW = H * W

    # Free metadata reshape: puts the long spatial axis on the TPU lane dim.
    # No dtype cast here -- the kernel reads native width and accumulates in f32.
    patch_flat = patch_nchw.reshape(N, C, HW)
    keys_f32 = keys.astype(jnp.float32)

    itemsize = jnp.dtype(patch_flat.dtype).itemsize
    vmem_limit = _vmem_limit_bytes()
    tn, thw = _choose_tiles(N, C, HW, E, patch_flat.dtype, vmem_limit)
    sub_hw = min(thw, _SUB_LANES)
    grid = (pl.cdiv(N, tn), pl.cdiv(HW, thw))

    kernel = functools.partial(
        _router_kernel, threshold=float(threshold), sub_hw=sub_hw)

    cost = pl.CostEstimate(
        flops=2 * N * C * (HW + E),
        transcendentals=N * (E + 3),
        bytes_accessed=N * C * HW * itemsize + E * C * 4 + N * (E + C) * 4,
    )

    weights, emb = pl.pallas_call(
        kernel,
        out_shape=(
            jax.ShapeDtypeStruct((N, E), jnp.float32),
            jax.ShapeDtypeStruct((N, C), jnp.float32),
        ),
        grid=grid,
        in_specs=[
            # double-buffered lane-dense patch tile
            pl.BlockSpec((tn, C, thw), lambda i, j: (i, 0, j)),
            # keys stay VMEM-resident
            pl.BlockSpec((E, C), lambda i, j: (0, 0)),
        ],
        out_specs=(
            pl.BlockSpec((tn, E), lambda i, j: (i, 0)),
            pl.BlockSpec((tn, C), lambda i, j: (i, 0)),
        ),
        scratch_shapes=[pltpu.VMEM((tn, C), jnp.float32)],   # pooled-sum accumulator
        compiler_params=pltpu.CompilerParams(
            # N tiles independent (shardable across v7x's 2 TCs); HW chunks are
            # a reduction into the scratch accumulator.
            dimension_semantics=("parallel", "arbitrary"),
            vmem_limit_bytes=vmem_limit,
        ),
        cost_estimate=cost,
    )(patch_flat, keys_f32)
    return weights, emb


def _l2_normalize(x, axis=-1, eps=1e-12):
    n = jnp.sqrt(jnp.sum(x * x, axis=axis, keepdims=True))
    return x / jnp.maximum(n, eps)


def ema_update_keys(keys, patch_emb, weights, alpha=0.99):
    """Functional equivalent of Router.ema (plain JAX glue, not the hot path)."""
    w_sum = jnp.sum(weights, axis=0)                              # (E,)
    weighted = weights.T @ patch_emb                              # (E, C)
    centroid = weighted / (w_sum[:, None] + 1e-8)
    centroid = _l2_normalize(centroid, axis=-1)
    new_keys = _l2_normalize(alpha * keys + (1.0 - alpha) * centroid, axis=-1)
    return jnp.where((w_sum > 0.0)[:, None], new_keys, keys)


@functools.partial(jax.jit, static_argnames=("threshold", "enable_ema"))
def router_forward(patch_nchw, keys, threshold, enable_ema=True):
    weights, emb = router_weights(patch_nchw, keys, threshold)
    new_keys = ema_update_keys(keys, emb, weights) if enable_ema else keys
    return weights, new_keys


if __name__ == "__main__":
    # Small shapes consistent with the module:
    #   B=2, nP=4  -> N = B*nP = 8 patches
    #   channels = C + 4 = 8, spatial nH = nW = 16, num_experts = 4
    B, nP, CH, H, W = 2, 4, 8, 16, 16
    NUM_EXPERTS = 4
    THRESHOLD = 0.1

    key = jax.random.PRNGKey(0)
    k_patch, k_keys = jax.random.split(key)

    patch = jax.random.normal(k_patch, (B * nP, CH, H, W), dtype=jnp.float32)
    # Deterministic stand-in for the K-Means-initialized keys (unit-norm rows).
    keys = _l2_normalize(
        jax.random.normal(k_keys, (NUM_EXPERTS, CH), dtype=jnp.float32), axis=-1)

    weights, new_keys = router_forward(patch, keys, THRESHOLD, enable_ema=True)
    jax.block_until_ready((weights, new_keys))

    assert weights.shape == (B * nP, NUM_EXPERTS)
    assert new_keys.shape == (NUM_EXPERTS, CH)
    print("KERNEL_OK")
</pallas_src>

<mosaic_0001>
module attributes {stable_mosaic.version = 11 : i64} {
  func.func @_router_kernel(%arg0: i32, %arg1: i32, %arg2: memref<8x8x256xf32, #tpu.memory_space<vmem>>, %arg3: memref<4x8xf32, #tpu.memory_space<vmem>>, %arg4: memref<8x4xf32, #tpu.memory_space<vmem>>, %arg5: memref<8x8xf32, #tpu.memory_space<vmem>>, %arg6: memref<8x8xf32, #tpu.memory_space<vmem>>) attributes {dimension_semantics = [#tpu.dimension_semantics<parallel>, #tpu.dimension_semantics<arbitrary>], iteration_bounds = array<i64: 1, 1>, scalar_prefetch = 0 : i64, scratch_operands = 1 : i64, tpu.core_type = #tpu.core_type<tc>, window_params = [{transform_indices = @transform_0, window_bounds = array<i64: 8, 8, 256>}, {pipeline_mode = #tpu.pipeline_mode<synchronous>, transform_indices = @transform_1, window_bounds = array<i64: 4, 8>}, {transform_indices = @transform_2, window_bounds = array<i64: 8, 4>}, {transform_indices = @transform_3, window_bounds = array<i64: 8, 8>}]} {
    %c0_i32 = arith.constant 0 : i32
    %0 = arith.cmpi eq, %arg1, %c0_i32 : i32
    %1 = arith.extui %0 : i1 to i32
    %c0_i32_0 = arith.constant 0 : i32
    %2 = arith.cmpi ne, %1, %c0_i32_0 : i32
    scf.if %2 {
      %cst_9 = arith.constant 0.000000e+00 : f32
      %11 = vector.broadcast %cst_9 : f32 to vector<8x8xf32>
      %c0_10 = arith.constant 0 : index
      %c0_11 = arith.constant 0 : index
      %12 = vector.load %arg6[%c0_10, %c0_11] : memref<8x8xf32, #tpu.memory_space<vmem>>, vector<8x8xf32>
      tpu.vector_store %arg6[%c0_10, %c0_11], %11 {strides = array<i32>} : memref<8x8xf32, #tpu.memory_space<vmem>>, vector<8x8xf32>,
    } else {
    }
    %c0 = arith.constant 0 : index
    %c0_1 = arith.constant 0 : index
    %c0_2 = arith.constant 0 : index
    %3 = vector.load %arg2[%c0, %c0_1, %c0_2] : memref<8x8x256xf32, #tpu.memory_space<vmem>>, vector<8x8x256xf32>
    %cst = arith.constant dense<0.000000e+00> : vector<8x8xf32>
    %4 = vector.multi_reduction <add>, %3, %cst [2] : vector<8x8x256xf32> to vector<8x8xf32>
    %c0_3 = arith.constant 0 : index
    %c0_4 = arith.constant 0 : index
    %5 = vector.load %arg6[%c0_3, %c0_4] : memref<8x8xf32, #tpu.memory_space<vmem>>, vector<8x8xf32>
    %6 = arith.addf %5, %4 : vector<8x8xf32>
    %c0_5 = arith.constant 0 : index
    %c0_6 = arith.constant 0 : index
    %7 = vector.load %arg6[%c0_5, %c0_6] : memref<8x8xf32, #tpu.memory_space<vmem>>, vector<8x8xf32>
    tpu.vector_store %arg6[%c0_5, %c0_6], %6 {strides = array<i32>} : memref<8x8xf32, #tpu.memory_space<vmem>>, vector<8x8xf32>,
    %c0_i32_7 = arith.constant 0 : i32
    %8 = arith.cmpi eq, %arg1, %c0_i32_7 : i32
    %9 = arith.extui %8 : i1 to i32
    %c0_i32_8 = arith.constant 0 : i32
    %10 = arith.cmpi ne, %9, %c0_i32_8 : i32
    scf.if %10 {
      %c0_9 = arith.constant 0 : index
      %c0_10 = arith.constant 0 : index
      %11 = vector.load %arg6[%c0_9, %c0_10] : memref<8x8xf32, #tpu.memory_space<vmem>>, vector<8x8xf32>
      %12 = arith.mulf %11, %11 : vector<8x8xf32>
      %cst_11 = arith.constant dense<0.000000e+00> : vector<8xf32>
      %13 = vector.multi_reduction <add>, %12, %cst_11 [1] : vector<8x8xf32> to vector<8xf32>
      %14 = vector.shape_cast %13 : vector<8xf32> to vector<8x1xf32>
      %cst_12 = arith.constant 1.000000e-24 : f32
      %15 = vector.broadcast %cst_12 : f32 to vector<8x1xf32>
      %16 = arith.maximumf %14, %15 : vector<8x1xf32>
      %17 = math.rsqrt %16 : vector<8x1xf32>
      %18 = vector.broadcast %17 : vector<8x1xf32> to vector<8x8xf32>
      %19 = arith.mulf %11, %18 : vector<8x8xf32>
      %c0_13 = arith.constant 0 : index
      %c0_14 = arith.constant 0 : index
      %20 = vector.load %arg5[%c0_13, %c0_14] : memref<8x8xf32, #tpu.memory_space<vmem>>, vector<8x8xf32>
      tpu.vector_store %arg5[%c0_13, %c0_14], %19 {strides = array<i32>} : memref<8x8xf32, #tpu.memory_space<vmem>>, vector<8x8xf32>,
      %c0_15 = arith.constant 0 : index
      %c0_16 = arith.constant 0 : index
      %21 = vector.load %arg3[%c0_15, %c0_16] : memref<4x8xf32, #tpu.memory_space<vmem>>, vector<4x8xf32>
      %cst_17 = arith.constant dense<0.000000e+00> : vector<8x4xf32>
      %22 = tpu.matmul %19, %21, %cst_17 {dimension_numbers = #tpu.dot_dimension_numbers<[1], [1], [0], [0], [0, 0, 1, 0], [], []>} : vector<8x8xf32>, vector<4x8xf32>, vector<8x4xf32> -> vector<8x4xf32>
      %cst_18 = arith.constant dense<0xFF800000> : vector<8xf32>
      %23 = vector.multi_reduction <maximumf>, %22, %cst_18 [1] : vector<8x4xf32> to vector<8xf32>
      %24 = vector.shape_cast %23 : vector<8xf32> to vector<8x1xf32>
      %25 = vector.broadcast %24 : vector<8x1xf32> to vector<8x4xf32>
      %26 = arith.subf %22, %25 : vector<8x4xf32>
      %27 = math.exp %26 : vector<8x4xf32>
      %cst_19 = arith.constant dense<0.000000e+00> : vector<8xf32>
      %28 = vector.multi_reduction <add>, %27, %cst_19 [1] : vector<8x4xf32> to vector<8xf32>
      %29 = vector.shape_cast %28 : vector<8xf32> to vector<8x1xf32>
      %30 = tpu.reciprocal %29 : vector<8x1xf32> -> vector<8x1xf32>
      %31 = vector.broadcast %30 : vector<8x1xf32> to vector<8x4xf32>
      %32 = arith.mulf %27, %31 : vector<8x4xf32>
      %cst_20 = arith.constant 1.000000e-01 : f32
      %33 = vector.broadcast %cst_20 : f32 to vector<8x4xf32>
      %34 = arith.cmpf ogt, %32, %33 : vector<8x4xf32>
      %cst_21 = arith.constant 0.000000e+00 : f32
      %35 = vector.broadcast %cst_21 : f32 to vector<8x4xf32>
      %36 = arith.select %34, %32, %35 : vector<8x4xi1>, vector<8x4xf32>
      %cst_22 = arith.constant dense<0.000000e+00> : vector<8xf32>
      %37 = vector.multi_reduction <add>, %36, %cst_22 [1] : vector<8x4xf32> to vector<8xf32>
      %38 = vector.shape_cast %37 : vector<8xf32> to vector<8x1xf32>
      %cst_23 = arith.constant 9.99999993E-9 : f32
      %39 = vector.broadcast %cst_23 : f32 to vector<8x1xf32>
      %40 = arith.addf %38, %39 : vector<8x1xf32>
      %41 = tpu.reciprocal %40 : vector<8x1xf32> -> vector<8x1xf32>
      %42 = vector.broadcast %41 : vector<8x1xf32> to vector<8x4xf32>
      %43 = arith.mulf %36, %42 : vector<8x4xf32>
      %c0_24 = arith.constant 0 : index
      %c0_25 = arith.constant 0 : index
      %44 = vector.load %arg4[%c0_24, %c0_25] : memref<8x4xf32, #tpu.memory_space<vmem>>, vector<8x4xf32>
      tpu.vector_store %arg4[%c0_24, %c0_25], %43 {strides = array<i32>} : memref<8x4xf32, #tpu.memory_space<vmem>>, vector<8x4xf32>,
    } else {
    }
    return
  }
  func.func @transform_0(%arg0: i32, %arg1: i32) -> (i32, i32, i32) {
    %c0_i32 = arith.constant 0 : i32
    %c0_i32_0 = arith.constant 0 : i32
    return %arg0, %c0_i32, %arg1 : i32, i32, i32
  }
  func.func @transform_1(%arg0: i32, %arg1: i32) -> (i32, i32) {
    %c0_i32 = arith.constant 0 : i32
    %c0_i32_0 = arith.constant 0 : i32
    %c0_i32_1 = arith.constant 0 : i32
    return %c0_i32, %c0_i32_0 : i32, i32
  }
  func.func @transform_2(%arg0: i32, %arg1: i32) -> (i32, i32) {
    %c0_i32 = arith.constant 0 : i32
    %c0_i32_0 = arith.constant 0 : i32
    return %arg0, %c0_i32 : i32, i32
  }
  func.func @transform_3(%arg0: i32, %arg1: i32) -> (i32, i32) {
    %c0_i32 = arith.constant 0 : i32
    %c0_i32_0 = arith.constant 0 : i32
    return %arg0, %c0_i32 : i32, i32
  }
}

</mosaic_0001>

<bundles_post_ra>
// kernel: router_forward.1
= control target key start
LH: loop header
LB: loop body
LE: loop exit
PB: predicated region body
PF: predicated region fallthrough
CT: control target
= control target key end

     0   :  { %9 = vsyncpa [#allocation4], 0  ;;  %s495_s0 = inlined_call_operand.hbm [shape: f32[8,8,256], index: 0, kind: input, shape index: {}]   ;;  %s496_s1 = inlined_call_operand.hbm [shape: f32[4,8], index: 1, kind: input, shape index: {}]   ;;  %s497_s2 = inlined_call_operand.hbm [shape: f32[8,4], index: 2, kind: output, shape index: {0}]   ;;  %s498_s3 = inlined_call_operand.hbm [shape: f32[8,8], index: 3, kind: output, shape index: {1}]  }
   0x1   :  { %10 = vsyncpa [#allocation7], 0 }
   0x2   :  { %11 = vsyncpa [#allocation5], 0 }
   0x3   :  { %12 = vsyncpa [#allocation10], 0  ;;  %s409_s12 = smov [#allocation3]   ;;  %s313_s16 = scalar_lea.hbm %s495_s0, 2048 }
   0x4   :  { %s18_s13 = sshll.u32 %s409_s12, 4  ;;  %p314_p0 = scmp.ne.s32.totalorder %s495_s0, %s313_s16  ;;  %s19_s13 = int_to_ptr.vmem [resolvable:$true] %s18_s13 }
   0x5   :  { %p317_p1 = scmp.lt.u32.totalorder %s313_s16, %s495_s0 }
   0x7   :  { %p319_p2 = pnand %p317_p1, %p314_p0 }
   0x9   :  { %322 = shalt.err (!%p319_p2)
}
   0xa   :  { %s323_s21 = scalar_lea.vmem %s19_s13, 2048  ;;  %p328_p4 = scmp.lt.s32.totalorder %s19_s13, %s19_s13 }
   0xb   :  { %p324_p3 = scmp.ne.s32.totalorder %s19_s13, %s323_s21  ;;  %p329_p5 = scmp.lt.s32.totalorder %s323_s21, %s323_s21 }
   0xd   :  { %p330_p6 = por %p329_p5, %p328_p4 }
   0xf   :  { %p331_p7 = pnand %p330_p6, %p324_p3 }
  0x11   :  { %334 = shalt.err (!%p331_p7)
}
  0x12   :  { %s410_s22 = smov 256   ;;  %s411_s23 = smov 16  }
  0x13   :  { %24 = dma.hbm_to_vmem [thread:$0]  %s495_s0, 2048, %s19_s13, [#allocation4], %s410_s22, %s410_s22, %s411_s23  }
  0x14   :  { %s412_s26 = smov [#allocation6]   ;;  %s335_s30 = scalar_lea.hbm %s496_s1, 64 }
  0x15   :  { %s31_s27 = sshll.u32 %s412_s26, 4  ;;  %p336_p8 = scmp.ne.s32.totalorder %s496_s1, %s335_s30  ;;  %s32_s27 = int_to_ptr.vmem [resolvable:$true] %s31_s27 }
  0x16   :  { %p339_p9 = scmp.lt.u32.totalorder %s335_s30, %s496_s1 }
  0x18   :  { %p341_p10 = pnand %p339_p9, %p336_p8 }
  0x1a   :  { %344 = shalt.err (!%p341_p10)
}
  0x1b   :  { %s345_s8 = scalar_lea.vmem %s32_s27, 64  ;;  %p350_p12 = scmp.lt.s32.totalorder %s32_s27, %s32_s27 }
  0x1c   :  { %p346_p11 = scmp.ne.s32.totalorder %s32_s27, %s345_s8  ;;  %p351_p13 = scmp.lt.s32.totalorder %s345_s8, %s345_s8 }
  0x1e   :  { %p352_p0 = por %p351_p13, %p350_p12 }
  0x20   :  { %p353_p1 = pnand %p352_p0, %p346_p11 }
  0x22   :  { %356 = shalt.err (!%p353_p1)
}
  0x23   :  { %34 = dma.hbm_to_vmem [thread:$0]  %s496_s1, 64, %s32_s27, [#allocation7]  }
  0x24   :  { %401 = dma.done.wait [#allocation4], 2048  }
  0x25   :  { %402 = vsyncadd [#allocation4], 4294965248 }
  0x26   :  { %403 = dma.done.wait [#allocation7], 64  }
  0x27   :  { %404 = vsyncadd [#allocation7], 4294967232  ;;  %v47_v0 = vld [vmem:[#allocation3] sm:$0xff]  ;;  %v48_v1 = vld [vmem:[#allocation3 + $0x8] sm:$0xff]  ;;  %vm45_vm0 = vcmask 64512   ;;  %v413_v24 = vmov 0.0   ;;  %v96_v25 = vlaneseq }
  0x28   :  { %v51_v2 = vld [vmem:[#allocation3 + $0x20] sm:$0xff]  ;;  %v63_v3 = vadd.f32 %v48_v1, %v47_v0  ;;  %v52_v4 = vld [vmem:[#allocation3 + $0x28] sm:$0xff]  ;;  %v49_v5 = vld [vmem:[#allocation3 + $0x10] sm:$0xff]  ;;  %46 = vst.msk [vmem:[#allocation2] sm:$0xff] %vm45_vm0, %v413_v24  ;;  %292 = vmatprep.subr.mxu0 %v413_v24  ;;  %vm130_vm1 = vcmask 1041409   ;;  %vm132_vm2 = vcmask 1042434  }
  0x29   :  { %v50_v6 = vld [vmem:[#allocation3 + $0x18] sm:$0xff]  ;;  %v69_v7 = vadd.f32 %v52_v4, %v51_v2  ;;  %v53_v8 = vld [vmem:[#allocation3 + $0x30] sm:$0xff]  ;;  %v55_v12 = vld [vmem:[#allocation3 + $0x40] sm:$0xff]  ;;  %v97_v26 = vand.u32 127, %v96_v25  ;;  %v99_v27 = vshrl.u32 %v96_v25, 7  ;;  %vm134_vm3 = vcmask 1043459  }
  0x2a   :  { %v54_v9 = vld [vmem:[#allocation3 + $0x38] sm:$0xff]  ;;  %64 = vadd.xlane.f32.xlu0 %v63_v3  ;;  %v66_v10 = vadd.f32 %v50_v6, %v49_v5  ;;  %v56_v13 = vld [vmem:[#allocation3 + $0x48] sm:$0xff]  ;;  %v57_v14 = vld [vmem:[#allocation3 + $0x50] sm:$0xff]  ;;  %vm136_vm4 = vcmask 1044484   ;;  %vm138_vm5 = vcmask 1045509   ;;  %vm140_vm6 = vcmask 1046534  }
  0x2b   :  { %70 = vadd.xlane.f32.xlu1 %v69_v7  ;;  %v72_v11 = vadd.f32 %v54_v9, %v53_v8  ;;  %v58_v15 = vld [vmem:[#allocation3 + $0x58] sm:$0xff]  ;;  %v75_v16 = vadd.f32 %v56_v13, %v55_v12  ;;  %v59_v18 = vld [vmem:[#allocation3 + $0x60] sm:$0xff]  ;;  %v60_v19 = vld [vmem:[#allocation3 + $0x68] sm:$0xff]  ;;  %v100_v29 = vsub.s32 %v97_v26, %v99_v27  ;;  %vm142_vm7 = vcmask 1047559   ;;  %s415_s1 = smov [#allocation9]  }
  0x2c   :  { %v78_v17 = vadd.f32 %v58_v15, %v57_v14  ;;  %v61_v20 = vld [vmem:[#allocation3 + $0x70] sm:$0xff]  ;;  %v62_v21 = vld [vmem:[#allocation3 + $0x78] sm:$0xff]  ;;  %v81_v22 = vadd.f32 %v60_v19, %v59_v18  ;;  %v160_v57 = vld [vmem:[#allocation6] sm:$0xf]  ;;  %vm414_vm8 = vmmov 0   ;;  %vm237_vm9 = vcmask 31744  }
  0x2d   :  { %v84_v23 = vadd.f32 %v62_v21, %v61_v20  ;;  %293 = vmatpush3.xpose.msk.msra.mxu0 %vm45_vm0, %v160_v57  ;;  %294 = vmatprep.mubr.msk.f32.mxu0 %vm414_vm8, %v413_v24  ;;  %s274_s10 = sshll.u32 %s415_s1, 4  ;;  %s275_s10 = int_to_ptr.vmem [resolvable:$true] %s274_s10 }
  0x2e   :  { %67 = vadd.xlane.f32.xlu0 %v66_v10  ;;  %s357_s11 = scalar_lea.vmem %s275_s10, 128  ;;  %p362_p3 = scmp.lt.s32.totalorder %s275_s10, %s275_s10 }
  0x2f   :  { %73 = vadd.xlane.f32.xlu1 %v72_v11  ;;  %v87_v49 = vld [vmem:[#allocation2] sm:$0xff]  ;;  %p358_p2 = scmp.ne.s32.totalorder %s275_s10, %s357_s11  ;;  %p363_p4 = scmp.lt.s32.totalorder %s357_s11, %s357_s11 }
  0x31   :  { %p364_p5 = por %p363_p4, %p362_p3 }
  0x32   :  { %76 = vadd.xlane.f32.xlu0 %v75_v16 }
  0x33   :  { %79 = vadd.xlane.f32.xlu1 %v78_v17  ;;  %p365_p6 = pnand %p364_p5, %p358_p2 }
  0x36   :  { %82 = vadd.xlane.f32.xlu0 %v81_v22 }
  0x37   :  { %85 = vadd.xlane.f32.xlu1 %v84_v23 }
  0xb7   :  { %v65_v28 = vpop.xlane.xlu0 %64 }
  0xb8   :  { %v71_v30 = vpop.xlane.xlu1 %70  ;;  %v101_v32 = vrot.slane %v65_v28, %v100_v29 }
  0xb9   :  { %v109_v35 = vrot.slane %v71_v30, %v100_v29 }
  0xbb   :  { %v68_v31 = vpop.xlane.xlu0 %67 }
  0xbc   :  { %v105_v33 = vrot.slane %v68_v31, %v100_v29  ;;  %v74_v34 = vpop.xlane.xlu1 %73 }
  0xbd   :  { %v113_v36 = vrot.slane %v74_v34, %v100_v29 }
  0xbe   :  { %v131_v37 = vsel %vm130_vm1, %v105_v33, %v101_v32 }
  0xbf   :  { %v133_v38 = vsel %vm132_vm2, %v109_v35, %v131_v37  ;;  %v77_v39 = vpop.xlane.xlu0 %76 }
  0xc0   :  { %v135_v40 = vsel %vm134_vm3, %v113_v36, %v133_v38  ;;  %v117_v41 = vrot.slane %v77_v39, %v100_v29  ;;  %v80_v42 = vpop.xlane.xlu1 %79 }
  0xc1   :  { %v121_v43 = vrot.slane %v80_v42, %v100_v29 }
  0xc2   :  { %v137_v44 = vsel %vm136_vm4, %v117_v41, %v135_v40 }
  0xc3   :  { %v83_v45 = vpop.xlane.xlu0 %82  ;;  %v139_v48 = vsel %vm138_vm5, %v121_v43, %v137_v44 }
  0xc4   :  { %v125_v46 = vrot.slane %v83_v45, %v100_v29  ;;  %v86_v47 = vpop.xlane.xlu1 %85 }
  0xc5   :  { %v129_v50 = vrot.slane %v86_v47, %v100_v29 }
  0xc6   :  { %v141_v51 = vsel %vm140_vm6, %v125_v46, %v139_v48 }
  0xc7   :  { %v143_v52 = vsel %vm142_vm7, %v129_v50, %v141_v51 }
  0xc8   :  { %v145_v53 = vadd.f32 %v143_v52, %v87_v49 }
  0xca   :  { %147 = vst.msk [vmem:[#allocation2] sm:$0xff] %vm45_vm0, %v145_v53 }
  0xd1   :  { %v151_v54 = vld [vmem:[#allocation2] sm:$0xff] }
  0xd2   :  { %v152_v55 = vmul.f32 %v151_v54, %v151_v54 }
  0xd4   :  { %v153_v56 = vsel %vm45_vm0, %v152_v55, 0.0 }
  0xd5   :  { %154 = vadd.xlane.f32.xlu0 %v153_v56 }
 0x162   :  { %v155_v58 = vpop.xlane.xlu0 %154 }
 0x163   :  { %v156_v59 = vmax.f32 %v155_v58, 1e-24 }
 0x165   :  { %305 = vrsqrt.f32 %v156_v59 }
 0x16f   :  { %v306_v60 = vpop.eup %305 }
 0x170   :  { %v158_v61 = vmul.f32 %v306_v60, %v151_v54 }
 0x172   :  { %295 = vmatmul.mubr.msk.f32.vlgmr.msra.gmra.mrb[0].mxu0 %vm45_vm0, %v158_v61  ;;  %159 = vst.msk [vmem:[#allocation9] sm:$0xff] %vm45_vm0, %v158_v61 }
 0x245   :  { %v233_v62 = vpop.f32.mrb[0].mxu0 }
 0x246   :  { %v296_v63 = vpop.f32.mrb[1].mxu0  ;;  %v238_v0 = vsel %vm237_vm9, %v233_v62, -inf }
 0x247   :  { %239 = vmax.xlane.f32.xlu1 %v238_v0 }
 0x2d4   :  { %v240_v1 = vpop.xlane.xlu1 %239 }
 0x2d5   :  { %v241_v2 = vsub.f32 %v233_v62, %v240_v1 }
 0x2d7   :  { %v242_v3 = vmul.f32 1.442695, %v241_v2 }
 0x2d9   :  { %307 = vpow2.f32 %v242_v3 }
 0x2e3   :  { %v308_v4 = vpop.eup %307 }
 0x2e4   :  { %v244_v5 = vsel %vm237_vm9, %v308_v4, 0.0 }
 0x2e5   :  { %245 = vadd.xlane.f32.xlu0 %v244_v5 }
 0x372   :  { %v246_v6 = vpop.xlane.xlu0 %245 }
 0x373   :  { %309 = vrcp.f32 %v246_v6 }
 0x37d   :  { %v310_v7 = vpop.eup %309 }
 0x37e   :  { %v248_v8 = vmul.f32 %v310_v7, %v308_v4 }
 0x380   :  { %vm249_vm10 = vcmp.gt.f32.partialorder %v248_v8, 0.1 }
 0x381   :  { %v250_v9 = vsel %vm249_vm10, %v248_v8, 0.0 }
 0x382   :  { %v251_v10 = vsel %vm237_vm9, %v250_v9, 0.0 }
 0x383   :  { %252 = vadd.xlane.f32.xlu1 %v251_v10 }
 0x384   :  { %368 = shalt.err (!%p365_p6)
}
 0x385   :  { %s369_s14 = scalar_lea.hbm %s498_s3, 128 }
 0x386   :  { %p370_p7 = scmp.ne.s32.totalorder %s498_s3, %s369_s14  ;;  %p373_p8 = scmp.lt.u32.totalorder %s369_s14, %s498_s3 }
 0x388   :  { %p375_p9 = pnand %p373_p8, %p370_p7 }
 0x38a   :  { %378 = shalt.err (!%p375_p9)
}
 0x38b   :  { %277 = dma.vmem_to_hbm [thread:$0]  %s275_s10, 128, %s498_s3, [#allocation10]  }
 0x38c   :  { %s416_s21 = smov [#allocation8]  }
 0x38d   :  { %s264_s22 = sshll.u32 %s416_s21, 4  ;;  %s265_s22 = int_to_ptr.vmem [resolvable:$true] %s264_s22 }
 0x38e   :  { %s379_s23 = scalar_lea.vmem %s265_s22, 128  ;;  %p384_p11 = scmp.lt.s32.totalorder %s265_s22, %s265_s22 }
 0x38f   :  { %p380_p10 = scmp.ne.s32.totalorder %s265_s22, %s379_s23  ;;  %p385_p12 = scmp.lt.s32.totalorder %s379_s23, %s379_s23 }
 0x391   :  { %p386_p13 = por %p385_p12, %p384_p11 }
 0x393   :  { %p387_p0 = pnand %p386_p13, %p380_p10 }
 0x410   :  { %v253_v11 = vpop.xlane.xlu1 %252 }
 0x411   :  { %v254_v12 = vadd.f32 1e-08, %v253_v11 }
 0x413   :  { %311 = vrcp.f32 %v254_v12 }
 0x41d   :  { %v312_v13 = vpop.eup %311 }
 0x41e   :  { %v256_v14 = vmul.f32 %v312_v13, %v250_v9 }
 0x420   :  { %257 = vst.msk [vmem:[#allocation8] sm:$0xff] %vm237_vm9, %v256_v14 }
 0x421   :  { %390 = shalt.err (!%p387_p0)
}
 0x422   :  { %s391_s3 = scalar_lea.hbm %s497_s2, 128 }
 0x423   :  { %p392_p1 = scmp.ne.s32.totalorder %s497_s2, %s391_s3  ;;  %p395_p2 = scmp.lt.u32.totalorder %s391_s3, %s497_s2 }
 0x425   :  { %p397_p3 = pnand %p395_p2, %p392_p1 }
 0x427   :  { %400 = shalt.err (!%p397_p3)
}
 0x428   :  { %267 = dma.vmem_to_hbm [thread:$0]  %s265_s22, 128, %s497_s2, [#allocation5]  }
 0x429   :  { %405 = dma.done.wait [#allocation5], 128  }
 0x42a   :  { %406 = vsyncadd [#allocation5], 4294967168 }
 0x42b   :  { %407 = dma.done.wait [#allocation10], 128  }
 0x42c   :  { %408 = vsyncadd [#allocation10], 4294967168 }
 0x42d   :  { %284 = vsyncpa [#allocation4], 1 }
 0x42e   :  { %285 = vsyncpa [#allocation7], 1 }
 0x42f   :  { %286 = vsyncpa [#allocation5], 1 }
 0x430   :  { %287 = vsyncpa [#allocation10], 1 }

</bundles_post_ra>
